<compile_context>
chip_gen: v7x
topology: tpu7x:2x2x1
jax: 0.10.0
libtpu: 0.0.40
codegen_flags: <defaults>
</compile_context>

<pallas_src>
import functools

import jax
import jax.numpy as jnp
from jax.experimental import pallas as pl
from jax.experimental.pallas import tpu as pltpu

LANE = 128
SUBLANE = 8
TILE_B = 256          # batch rows per grid step
HIDDEN_BODY = 128     # SimpleBody fc width / feature_size()
HIDDEN_HEAD = 512     # adv1 / val1 width


def _round_up(x, m):
    return (x + m - 1) // m * m


def _bucket_batch(batch):
    """Pad batch to a small set of buckets to limit Mosaic recompiles."""
    if batch <= TILE_B:
        return max(SUBLANE, pl.next_power_of_2(batch))
    return _round_up(batch, TILE_B)


def dueling_dqn_kernel(x_ref, w1_ref, b1_ref, wh_ref, bh_ref, w2_ref, b2_ref,
                       out_ref):
    """One batch tile of the fused DuelingDQN forward.

    x_ref : (T, Din)    f32   states
    w1_ref: (Din, 128)  bf16  SimpleBody fc weight
    b1_ref: (1, 128)    f32
    wh_ref: (128, 1024) bf16  [adv1 || val1] fused hidden weight
    bh_ref: (1, 1024)   f32   [ba1 || bv1]
    w2_ref: (1024, 128) bf16  fused head: cols[:A] = adv+val, cols[A:2A] = adv
    b2_ref: (1, 128)    f32   [ba2+bv2, ba2, 0, ...]
    out_ref:(T, 128)    f32   un-centered head (combine finished in wrapper)
    """
    # --- SimpleBody: fc + relu ------------------------------------------- MXU
    feat = jnp.dot(x_ref[...].astype(jnp.bfloat16), w1_ref[...],
                   preferred_element_type=jnp.float32)
    feat = jnp.maximum(feat + b1_ref[...], 0.0)                    # (T, 128)

    # --- fused adv1/val1 hidden layer (one wide matmul, one ReLU) -------- MXU
    hidden = jnp.dot(feat.astype(jnp.bfloat16), wh_ref[...],
                     preferred_element_type=jnp.float32)
    hidden = jnp.maximum(hidden + bh_ref[...], 0.0)                # (T, 1024)

    # --- fused head: cols[:A] = adv + val, cols[A:2A] = pure adv ---------- MXU
    # Lane-dense unmasked 128-wide store; no XLU work in the epilogue.
    out_ref[...] = jnp.dot(hidden.astype(jnp.bfloat16), w2_ref[...],
                           preferred_element_type=jnp.float32) + b2_ref[...]


def pack_params(p, num_actions):
    """Pack per-stream f32 params into fused bf16 weights + f32 biases."""
    A = num_actions
    hidden = p["wa1"].shape[1]                                    # 512
    assert 2 * A <= LANE, "need 2 * num_actions <= 128 lanes"

    wh = jnp.concatenate([p["wa1"], p["wv1"]], axis=1)            # (128, 1024)
    bh = jnp.concatenate([p["ba1"], p["bv1"]], axis=1)            # (1, 1024)

    # Fused head weight (1024, 128):
    #   rows [:512]  (adv stream): cols[:A] = wa2,           cols[A:2A] = wa2
    #   rows [512:]  (val stream): cols[:A] = wv2 broadcast,  cols[A:2A] = 0
    w2 = jnp.zeros((2 * hidden, LANE), jnp.float32)
    w2 = w2.at[:hidden, :A].set(p["wa2"])
    w2 = w2.at[hidden:, :A].set(jnp.broadcast_to(p["wv2"], (hidden, A)))
    w2 = w2.at[:hidden, A:2 * A].set(p["wa2"])

    b2 = jnp.zeros((1, LANE), jnp.float32)
    b2 = b2.at[:, :A].set(p["ba2"] + p["bv2"])
    b2 = b2.at[:, A:2 * A].set(p["ba2"])

    return dict(w1=p["w1"].astype(jnp.bfloat16), b1=p["b1"],
                wh=wh.astype(jnp.bfloat16), bh=bh,
                w2=w2.astype(jnp.bfloat16), b2=b2)


@functools.partial(jax.jit, static_argnames=("num_actions",))
def dueling_dqn_forward(x, packed, num_actions):
    batch, din = x.shape
    A = num_actions
    bp = _bucket_batch(batch)
    tile_b = min(bp, TILE_B)
    n_tiles = bp // tile_b
    x_pad = jnp.pad(x, ((0, bp - batch), (0, 0)))

    def full_spec(arr):  # full-shape, constant index_map -> VMEM-resident
        return pl.BlockSpec(arr.shape, lambda i: (0,) * arr.ndim)

    head = pl.pallas_call(
        dueling_dqn_kernel,
        out_shape=jax.ShapeDtypeStruct((bp, LANE), jnp.float32),
        grid=(n_tiles,),
        in_specs=[
            pl.BlockSpec((tile_b, din), lambda i: (i, 0)),   # x: streamed tiles
            full_spec(packed["w1"]), full_spec(packed["b1"]),
            full_spec(packed["wh"]), full_spec(packed["bh"]),
            full_spec(packed["w2"]), full_spec(packed["b2"]),
        ],
        out_specs=pl.BlockSpec((tile_b, LANE), lambda i: (i, 0)),
        compiler_params=pltpu.CompilerParams(
            dimension_semantics=("parallel",),        # megacore on v7x
            vmem_limit_bytes=32 * 1024 * 1024),
    )(x_pad, packed["w1"], packed["b1"], packed["wh"], packed["bh"],
      packed["w2"], packed["b2"])

    # Dueling combine.  head[:, :A] = adv + val ; head[:, A:2A] = pure adv.
    # The GLOBAL adv.mean() couples all batch tiles, so it is reduced here over
    # the real rows only (padded rows are sliced off) — one trivial XLA op.
    adv_mean = jnp.mean(head[:batch, A:2 * A])
    return head[:batch, :A] - adv_mean


def init_params(key, input_dim, num_actions,
                hidden_body=HIDDEN_BODY, hidden_head=HIDDEN_HEAD):
    """Deterministic torch-Linear-style init; weights stored as (in, out) f32."""
    def linear(key, fan_in, fan_out):
        kw, kb = jax.random.split(key)
        bound = 1.0 / jnp.sqrt(fan_in)
        w = jax.random.uniform(kw, (fan_in, fan_out), jnp.float32, -bound, bound)
        b = jax.random.uniform(kb, (1, fan_out), jnp.float32, -bound, bound)
        return w, b

    k1, k2, k3, k4, k5 = jax.random.split(key, 5)
    w1, b1 = linear(k1, input_dim, hidden_body)        # SimpleBody.fc1
    wa1, ba1 = linear(k2, hidden_body, hidden_head)    # adv1
    wa2, ba2 = linear(k3, hidden_head, num_actions)    # adv2
    wv1, bv1 = linear(k4, hidden_body, hidden_head)    # val1
    wv2, bv2 = linear(k5, hidden_head, 1)              # val2
    return dict(w1=w1, b1=b1, wa1=wa1, ba1=ba1, wa2=wa2, ba2=ba2,
                wv1=wv1, bv1=bv1, wv2=wv2, bv2=bv2)


def reference_forward(x, p):
    """Pure-JAX reference on the ORIGINAL (unfused) params with the same
    bf16-operand / f32-accumulate matmul discipline as the kernel."""
    def mm(a, w):
        return jnp.dot(a.astype(jnp.bfloat16), w.astype(jnp.bfloat16),
                       preferred_element_type=jnp.float32)

    feat = jnp.maximum(mm(x, p["w1"]) + p["b1"], 0.0)
    adv = mm(jnp.maximum(mm(feat, p["wa1"]) + p["ba1"], 0.0), p["wa2"]) + p["ba2"]
    val = mm(jnp.maximum(mm(feat, p["wv1"]) + p["bv1"], 0.0), p["wv2"]) + p["bv2"]
    return val + adv - jnp.mean(adv)


if __name__ == "__main__":
    key = jax.random.PRNGKey(0)
    kx1, kx2, kp = jax.random.split(key, 3)

    input_dim, num_actions = 16, 6
    params = init_params(kp, input_dim, num_actions)
    packed = pack_params(params, num_actions)

    # Small act()-style batch (single grid tile).
    x_small = jax.random.normal(kx1, (2, input_dim), jnp.float32)
    out_small = jax.block_until_ready(
        dueling_dqn_forward(x_small, packed, num_actions))
    ref_small = reference_forward(x_small, params)
    assert out_small.shape == (2, num_actions)
    assert jnp.allclose(out_small, ref_small, atol=2e-3, rtol=2e-3), \
        "small-batch mismatch vs reference"

    # Training-size batch (multi-tile grid, resident weights, parallel axis).
    x_train = jax.random.normal(kx2, (300, input_dim), jnp.float32)
    out_train = jax.block_until_ready(
        dueling_dqn_forward(x_train, packed, num_actions))
    ref_train = reference_forward(x_train, params)
    assert out_train.shape == (300, num_actions)
    assert jnp.allclose(out_train, ref_train, atol=2e-3, rtol=2e-3), \
        "large-batch mismatch vs reference"

    print("KERNEL_OK")
</pallas_src>

<mosaic_0001>
module attributes {stable_mosaic.version = 11 : i64} {
  func.func @dueling_dqn_kernel(%arg0: i32, %arg1: memref<8x16xf32, #tpu.memory_space<vmem>>, %arg2: memref<16x128xbf16, #tpu.memory_space<vmem>>, %arg3: memref<1x128xf32, #tpu.memory_space<vmem>>, %arg4: memref<128x1024xbf16, #tpu.memory_space<vmem>>, %arg5: memref<1x1024xf32, #tpu.memory_space<vmem>>, %arg6: memref<1024x128xbf16, #tpu.memory_space<vmem>>, %arg7: memref<1x128xf32, #tpu.memory_space<vmem>>, %arg8: memref<8x128xf32, #tpu.memory_space<vmem>>) attributes {dimension_semantics = [#tpu.dimension_semantics<parallel>], iteration_bounds = array<i64: 1>, scalar_prefetch = 0 : i64, scratch_operands = 0 : i64, tpu.core_type = #tpu.core_type<tc>, window_params = [{transform_indices = @transform_0, window_bounds = array<i64: 8, 16>}, {pipeline_mode = #tpu.pipeline_mode<synchronous>, transform_indices = @transform_1, window_bounds = array<i64: 16, 128>}, {pipeline_mode = #tpu.pipeline_mode<synchronous>, transform_indices = @transform_2, window_bounds = array<i64: 1, 128>}, {pipeline_mode = #tpu.pipeline_mode<synchronous>, transform_indices = @transform_3, window_bounds = array<i64: 128, 1024>}, {pipeline_mode = #tpu.pipeline_mode<synchronous>, transform_indices = @transform_4, window_bounds = array<i64: 1, 1024>}, {pipeline_mode = #tpu.pipeline_mode<synchronous>, transform_indices = @transform_5, window_bounds = array<i64: 1024, 128>}, {pipeline_mode = #tpu.pipeline_mode<synchronous>, transform_indices = @transform_6, window_bounds = array<i64: 1, 128>}, {transform_indices = @transform_7, window_bounds = array<i64: 8, 128>}]} {
    %c0 = arith.constant 0 : index
    %c0_0 = arith.constant 0 : index
    %0 = vector.load %arg1[%c0, %c0_0] : memref<8x16xf32, #tpu.memory_space<vmem>>, vector<8x16xf32>
    %1 = arith.truncf %0 : vector<8x16xf32> to vector<8x16xbf16>
    %c0_1 = arith.constant 0 : index
    %c0_2 = arith.constant 0 : index
    %2 = vector.load %arg2[%c0_1, %c0_2] : memref<16x128xbf16, #tpu.memory_space<vmem>>, vector<16x128xbf16>
    %cst = arith.constant dense<0.000000e+00> : vector<8x128xf32>
    %3 = tpu.matmul %1, %2, %cst {dimension_numbers = #tpu.dot_dimension_numbers<[1], [0], [0], [1], [0, 0, 1, 1], [], []>} : vector<8x16xbf16>, vector<16x128xbf16>, vector<8x128xf32> -> vector<8x128xf32>
    %c0_3 = arith.constant 0 : index
    %c0_4 = arith.constant 0 : index
    %4 = vector.load %arg3[%c0_3, %c0_4] : memref<1x128xf32, #tpu.memory_space<vmem>>, vector<1x128xf32>
    %5 = vector.broadcast %4 : vector<1x128xf32> to vector<8x128xf32>
    %6 = arith.addf %3, %5 : vector<8x128xf32>
    %cst_5 = arith.constant 0.000000e+00 : f32
    %7 = vector.broadcast %cst_5 : f32 to vector<8x128xf32>
    %8 = arith.maximumf %6, %7 : vector<8x128xf32>
    %9 = arith.truncf %8 : vector<8x128xf32> to vector<8x128xbf16>
    %c0_6 = arith.constant 0 : index
    %c0_7 = arith.constant 0 : index
    %10 = vector.load %arg4[%c0_6, %c0_7] : memref<128x1024xbf16, #tpu.memory_space<vmem>>, vector<128x1024xbf16>
    %cst_8 = arith.constant dense<0.000000e+00> : vector<8x1024xf32>
    %11 = tpu.matmul %9, %10, %cst_8 {dimension_numbers = #tpu.dot_dimension_numbers<[1], [0], [0], [1], [0, 0, 1, 1], [], []>} : vector<8x128xbf16>, vector<128x1024xbf16>, vector<8x1024xf32> -> vector<8x1024xf32>
    %c0_9 = arith.constant 0 : index
    %c0_10 = arith.constant 0 : index
    %12 = vector.load %arg5[%c0_9, %c0_10] : memref<1x1024xf32, #tpu.memory_space<vmem>>, vector<1x1024xf32>
    %13 = vector.broadcast %12 : vector<1x1024xf32> to vector<8x1024xf32>
    %14 = arith.addf %11, %13 : vector<8x1024xf32>
    %cst_11 = arith.constant 0.000000e+00 : f32
    %15 = vector.broadcast %cst_11 : f32 to vector<8x1024xf32>
    %16 = arith.maximumf %14, %15 : vector<8x1024xf32>
    %17 = arith.truncf %16 : vector<8x1024xf32> to vector<8x1024xbf16>
    %c0_12 = arith.constant 0 : index
    %c0_13 = arith.constant 0 : index
    %18 = vector.load %arg6[%c0_12, %c0_13] : memref<1024x128xbf16, #tpu.memory_space<vmem>>, vector<1024x128xbf16>
    %cst_14 = arith.constant dense<0.000000e+00> : vector<8x128xf32>
    %19 = tpu.matmul %17, %18, %cst_14 {dimension_numbers = #tpu.dot_dimension_numbers<[1], [0], [0], [1], [0, 0, 1, 1], [], []>} : vector<8x1024xbf16>, vector<1024x128xbf16>, vector<8x128xf32> -> vector<8x128xf32>
    %c0_15 = arith.constant 0 : index
    %c0_16 = arith.constant 0 : index
    %20 = vector.load %arg7[%c0_15, %c0_16] : memref<1x128xf32, #tpu.memory_space<vmem>>, vector<1x128xf32>
    %21 = vector.broadcast %20 : vector<1x128xf32> to vector<8x128xf32>
    %22 = arith.addf %19, %21 : vector<8x128xf32>
    %c0_17 = arith.constant 0 : index
    %c0_18 = arith.constant 0 : index
    %23 = vector.load %arg8[%c0_17, %c0_18] : memref<8x128xf32, #tpu.memory_space<vmem>>, vector<8x128xf32>
    tpu.vector_store %arg8[%c0_17, %c0_18], %22 {strides = array<i32>} : memref<8x128xf32, #tpu.memory_space<vmem>>, vector<8x128xf32>,
    return
  }
  func.func @transform_0(%arg0: i32) -> (i32, i32) {
    %c0_i32 = arith.constant 0 : i32
    %c0_i32_0 = arith.constant 0 : i32
    return %arg0, %c0_i32 : i32, i32
  }
  func.func @transform_1(%arg0: i32) -> (i32, i32) {
    %c0_i32 = arith.constant 0 : i32
    %c0_i32_0 = arith.constant 0 : i32
    %c0_i32_1 = arith.constant 0 : i32
    return %c0_i32, %c0_i32_0 : i32, i32
  }
  func.func @transform_2(%arg0: i32) -> (i32, i32) {
    %c0_i32 = arith.constant 0 : i32
    %c0_i32_0 = arith.constant 0 : i32
    %c0_i32_1 = arith.constant 0 : i32
    return %c0_i32, %c0_i32_0 : i32, i32
  }
  func.func @transform_3(%arg0: i32) -> (i32, i32) {
    %c0_i32 = arith.constant 0 : i32
    %c0_i32_0 = arith.constant 0 : i32
    %c0_i32_1 = arith.constant 0 : i32
    return %c0_i32, %c0_i32_0 : i32, i32
  }
  func.func @transform_4(%arg0: i32) -> (i32, i32) {
    %c0_i32 = arith.constant 0 : i32
    %c0_i32_0 = arith.constant 0 : i32
    %c0_i32_1 = arith.constant 0 : i32
    return %c0_i32, %c0_i32_0 : i32, i32
  }
  func.func @transform_5(%arg0: i32) -> (i32, i32) {
    %c0_i32 = arith.constant 0 : i32
    %c0_i32_0 = arith.constant 0 : i32
    %c0_i32_1 = arith.constant 0 : i32
    return %c0_i32, %c0_i32_0 : i32, i32
  }
  func.func @transform_6(%arg0: i32) -> (i32, i32) {
    %c0_i32 = arith.constant 0 : i32
    %c0_i32_0 = arith.constant 0 : i32
    %c0_i32_1 = arith.constant 0 : i32
    return %c0_i32, %c0_i32_0 : i32, i32
  }
  func.func @transform_7(%arg0: i32) -> (i32, i32) {
    %c0_i32 = arith.constant 0 : i32
    %c0_i32_0 = arith.constant 0 : i32
    return %arg0, %c0_i32 : i32, i32
  }
}

</mosaic_0001>

<bundles_post_ra>
// kernel: dueling_dqn_forward.1
= control target key start
LH: loop header
LB: loop body
LE: loop exit
PB: predicated region body
PF: predicated region fallthrough
CT: control target
= control target key end

     0   :  { %12 = vsyncpa [#allocation3], 0  ;;  %s1878_s0 = inlined_call_operand.vmem [shape: f32[8,16], index: 0, kind: input, shape index: {}]   ;;  %s1879_s1 = inlined_call_operand.vmem [shape: bf16[16,128], index: 1, kind: input, shape index: {}]   ;;  %s1880_s2 = inlined_call_operand.vmem [shape: f32[1,128], index: 2, kind: input, shape index: {}]   ;;  %s1881_s3 = inlined_call_operand.hbm [shape: bf16[128,1024], index: 3, kind: input, shape index: {}]   ;;  %s1882_s4 = inlined_call_operand.vmem [shape: f32[1,1024], index: 4, kind: input, shape index: {}]   ;;  %s1883_s5 = inlined_call_operand.hbm [shape: bf16[1024,128], index: 5, kind: input, shape index: {}]   ;;  %s1884_s6 = inlined_call_operand.vmem [shape: f32[1,128], index: 6, kind: input, shape index: {}]   ;;  %s1885_s7 = inlined_call_operand.vmem [shape: f32[8,128], index: 7, kind: output, shape index: {}]  }
   0x1   :  { %13 = vsyncpa [#allocation5], 0  ;;  %s1760_s24 = smov [#allocation2]   ;;  %s1712_s28 = scalar_lea.hbm %s1881_s3, 8192 }
   0x2   :  { %s25_s25 = sshll.u32 %s1760_s24, 4  ;;  %p1713_p0 = scmp.ne.s32.totalorder %s1881_s3, %s1712_s28  ;;  %s26_s25 = int_to_ptr.vmem [resolvable:$true] %s25_s25 }
   0x3   :  { %p1716_p1 = scmp.lt.u32.totalorder %s1712_s28, %s1881_s3 }
   0x5   :  { %p1718_p2 = pnand %p1716_p1, %p1713_p0 }
   0x7   :  { %1721 = shalt.err (!%p1718_p2)
}
   0x8   :  { %s1722_s10 = scalar_lea.vmem %s26_s25, 8192  ;;  %p1727_p4 = scmp.lt.s32.totalorder %s26_s25, %s26_s25 }
   0x9   :  { %p1723_p3 = scmp.ne.s32.totalorder %s26_s25, %s1722_s10  ;;  %p1728_p5 = scmp.lt.s32.totalorder %s1722_s10, %s1722_s10 }
   0xb   :  { %p1729_p6 = por %p1728_p5, %p1727_p4 }
   0xd   :  { %p1730_p7 = pnand %p1729_p6, %p1723_p3 }
   0xf   :  { %1733 = shalt.err (!%p1730_p7)
}
  0x10   :  { %s1761_s11 = smov 512   ;;  %s1762_s12 = smov 32  }
  0x11   :  { %31 = dma.hbm_to_vmem [thread:$0]  %s1881_s3, 8192, %s26_s25, [#allocation3], %s1761_s11, %s1761_s11, %s1762_s12  }
  0x12   :  { %s1763_s15 = smov [#allocation4]   ;;  %s1734_s19 = scalar_lea.hbm %s1883_s5, 8192 }
  0x13   :  { %s39_s16 = sshll.u32 %s1763_s15, 4  ;;  %p1735_p8 = scmp.ne.s32.totalorder %s1883_s5, %s1734_s19  ;;  %s40_s16 = int_to_ptr.vmem [resolvable:$true] %s39_s16 }
  0x14   :  { %p1738_p9 = scmp.lt.u32.totalorder %s1734_s19, %s1883_s5 }
  0x16   :  { %p1740_p10 = pnand %p1738_p9, %p1735_p8 }
  0x18   :  { %1743 = shalt.err (!%p1740_p10)
}
  0x19   :  { %s1744_s24 = scalar_lea.vmem %s40_s16, 8192  ;;  %p1749_p12 = scmp.lt.s32.totalorder %s40_s16, %s40_s16 }
  0x1a   :  { %p1745_p11 = scmp.ne.s32.totalorder %s40_s16, %s1744_s24  ;;  %p1750_p13 = scmp.lt.s32.totalorder %s1744_s24, %s1744_s24 }
  0x1c   :  { %p1751_p0 = por %p1750_p13, %p1749_p12 }
  0x1e   :  { %p1752_p1 = pnand %p1751_p0, %p1745_p11 }
  0x20   :  { %1755 = shalt.err (!%p1752_p1)
}
  0x21   :  { %s1764_s3 = smov 64   ;;  %s1765_s25 = smov 4  }
  0x22   :  { %45 = dma.hbm_to_vmem [thread:$0]  %s1883_s5, 8192, %s40_s16, [#allocation5], %s1764_s3, %s1764_s3, %s1765_s25  }
  0x23   :  { %1756 = dma.done.wait [#allocation3], 8192  }
  0x24   :  { %1757 = vsyncadd [#allocation3], 4294959104 }
  0x25   :  { %1758 = dma.done.wait [#allocation5], 8192  }
  0x26   :  { %1759 = vsyncadd [#allocation5], 4294959104  ;;  %v1766_v0 = vmov 0.0   ;;  %vm1767_vm0 = vmmov 0   ;;  %v1647_v1 = vld [vmem:[%s1879_s1] sm:$0xff]   ;;  %v118_v3 = vld [vmem:[#allocation2] sm:$0xff] }
  0x27   :  { %1632 = vmatprep.subr.bf16.mxu0 %v1766_v0  ;;  %1634 = vmatprep.mubr.msk.bf16.mxu0 %vm1767_vm0, %v1766_v0  ;;  %v55_v2 = vld [vmem:[%s1878_s0] sm:$0xff]  ;;  %v122_v4 = vld [vmem:[#allocation2 + $0x20] sm:$0xff]  ;;  %vm72_vm1 = vcmask 130048   ;;  %v119_v7 = vld [vmem:[#allocation2 + $0x8] sm:$0xff] }
  0x28   :  { %1633 = vmatpush3.bf16.msra.mxu0 %v1647_v1  ;;  %v56_v5 = vpack.c.bf16 %v55_v2, %v55_v2  ;;  %v1414_v6 = vcombine.high %v118_v3, %v122_v4  ;;  %v123_v8 = vld [vmem:[#allocation2 + $0x28] sm:$0xff]  ;;  %v1413_v9 = vcombine.low %v118_v3, %v122_v4  ;;  %v126_v10 = vld [vmem:[#allocation2 + $0x40] sm:$0xff]  ;;  %v120_v4 = vld [vmem:[#allocation2 + $0x10] sm:$0xff] }
  0x29   :  { %v1415_v11 = vcombine.low %v119_v7, %v123_v8  ;;  %v1416_v12 = vcombine.high %v119_v7, %v123_v8  ;;  %v130_v13 = vld [vmem:[#allocation2 + $0x60] sm:$0xff]  ;;  %v127_v14 = vld [vmem:[#allocation2 + $0x48] sm:$0xff]  ;;  %v125_v8 = vld [vmem:[#allocation2 + $0x38] sm:$0xff] }
  0x2a   :  { %v131_v15 = vld [vmem:[#allocation2 + $0x68] sm:$0xff]  ;;  %544 = vmatprep.subr.bf16.mxu1 %v1414_v6  ;;  %v1422_v16 = vcombine.high %v126_v10, %v130_v13  ;;  %v134_v18 = vld [vmem:[#allocation2 + $0x80] sm:$0xff]  ;;  %v1421_v23 = vcombine.low %v126_v10, %v130_v13  ;;  %v121_v6 = vld [vmem:[#allocation2 + $0x18] sm:$0xff] }
  0x2b   :  { %v1424_v17 = vcombine.high %v127_v14, %v131_v15  ;;  %v138_v19 = vld [vmem:[#allocation2 + $0xa0] sm:$0xff]  ;;  %v135_v20 = vld [vmem:[#allocation2 + $0x88] sm:$0xff]  ;;  %1635 = vmatmul.mubr.msk.bf16.vlgmr.msra.gmra.mrb[0].mxu0 %vm72_vm1, %v56_v5  ;;  %585 = vmatprep.subr.bf16.mxu0 %v1416_v12  ;;  %v1423_v22 = vcombine.low %v127_v14, %v131_v15  ;;  %v124_v5 = vld [vmem:[#allocation2 + $0x30] sm:$0xff]  ;;  %v1419_v10 = vcombine.low %v121_v6, %v125_v8  ;;  %v1768_v12 = vmov 0  }
  0x2c   :  { %v139_v21 = vld [vmem:[#allocation2 + $0xa8] sm:$0xff]  ;;  %545 = vmatpush1.bf16.msra.mxu1 %v1413_v9  ;;  %586 = vmatpush1.bf16.msra.mxu0 %v1415_v11  ;;  %v1430_v24 = vcombine.high %v134_v18, %v138_v19  ;;  %v142_v26 = vld [vmem:[#allocation2 + $0xc0] sm:$0xff]  ;;  %v1429_v31 = vcombine.low %v134_v18, %v138_v19  ;;  %v1418_v7 = vcombine.high %v120_v4, %v124_v5  ;;  %v1410_v13 = vld [vmem:[%s1880_s2] ss:$0 sm:$0xff] }
  0x2d   :  { %546 = vmatprep.subr.bf16.mxu1 %v1422_v16  ;;  %587 = vmatprep.subr.bf16.mxu0 %v1424_v17  ;;  %v1432_v25 = vcombine.high %v135_v20, %v139_v21  ;;  %v146_v27 = vld [vmem:[#allocation2 + $0xe0] sm:$0xff]  ;;  %v143_v28 = vld [vmem:[#allocation2 + $0xc8] sm:$0xff]  ;;  %v1431_v30 = vcombine.low %v135_v20, %v139_v21  ;;  %v1417_v9 = vcombine.low %v120_v4, %v124_v5  ;;  %v128_v17 = vld [vmem:[#allocation2 + $0x50] sm:$0xff] }
  0x2e   :  { %v147_v29 = vld [vmem:[#allocation2 + $0xe8] sm:$0xff]  ;;  %v150_v32 = vld [vmem:[#allocation2 + $0x100] sm:$0xff]  ;;  %v1438_v36 = vcombine.high %v142_v26, %v146_v27  ;;  %v1437_v39 = vcombine.low %v142_v26, %v146_v27  ;;  %v1420_v11 = vcombine.high %v121_v6, %v125_v8  ;;  %576 = vmatprep.mubr.bf16.mxu1 %v1768_v12  ;;  %617 = vmatprep.mubr.bf16.mxu0 %v1768_v12  ;;  %v132_v19 = vld [vmem:[#allocation2 + $0x70] sm:$0xff] }
  0x2f   :  { %v154_v33 = vld [vmem:[#allocation2 + $0x120] sm:$0xff]  ;;  %v151_v34 = vld [vmem:[#allocation2 + $0x108] sm:$0xff]  ;;  %v1440_v37 = vcombine.high %v143_v28, %v147_v29  ;;  %v1439_v38 = vcombine.low %v143_v28, %v147_v29  ;;  %v129_v20 = vld [vmem:[#allocation2 + $0x58] sm:$0xff] }
  0x30   :  { %547 = vmatpush1.bf16.msra.mxu1 %v1421_v23  ;;  %588 = vmatpush1.bf16.msra.mxu0 %v1423_v22  ;;  %v155_v35 = vld [vmem:[#allocation2 + $0x128] sm:$0xff]  ;;  %v158_v40 = vld [vmem:[#allocation2 + $0x140] sm:$0xff]  ;;  %v1446_v44 = vcombine.high %v150_v32, %v154_v33  ;;  %v1445_v47 = vcombine.low %v150_v32, %v154_v33  ;;  %v133_v21 = vld [vmem:[#allocation2 + $0x78] sm:$0xff] }
  0x31   :  { %548 = vmatprep.subr.bf16.mxu1 %v1430_v24  ;;  %589 = vmatprep.subr.bf16.mxu0 %v1432_v25  ;;  %v162_v41 = vld [vmem:[#allocation2 + $0x160] sm:$0xff]  ;;  %v159_v42 = vld [vmem:[#allocation2 + $0x148] sm:$0xff]  ;;  %v1448_v45 = vcombine.high %v151_v34, %v155_v35  ;;  %v1447_v46 = vcombine.low %v151_v34, %v155_v35  ;;  %v1426_v25 = vcombine.high %v128_v17, %v132_v19  ;;  %v136_v27 = vld [vmem:[#allocation2 + $0x90] sm:$0xff] }
  0x32   :  { %v163_v43 = vld [vmem:[#allocation2 + $0x168] sm:$0xff]  ;;  %v166_v48 = vld [vmem:[#allocation2 + $0x180] sm:$0xff]  ;;  %v1454_v52 = vcombine.high %v158_v40, %v162_v41  ;;  %v1453_v55 = vcombine.low %v158_v40, %v162_v41  ;;  %v1428_v26 = vcombine.high %v129_v20, %v133_v21  ;;  %v140_v28 = vld [vmem:[#allocation2 + $0xb0] sm:$0xff]  ;;  %v1427_v32 = vcombine.low %v129_v20, %v133_v21 }
  0x33   :  { %v170_v49 = vld [vmem:[#allocation2 + $0x1a0] sm:$0xff]  ;;  %v167_v50 = vld [vmem:[#allocation2 + $0x188] sm:$0xff]  ;;  %v1456_v53 = vcombine.high %v159_v42, %v163_v43  ;;  %v1455_v54 = vcombine.low %v159_v42, %v163_v43  ;;  %v137_v29 = vld [vmem:[#allocation2 + $0x98] sm:$0xff]  ;;  %v1434_v33 = vcombine.high %v136_v27, %v140_v28 }
  0x34   :  { %549 = vmatpush1.bf16.msra.mxu1 %v1429_v31  ;;  %590 = vmatpush1.bf16.msra.mxu0 %v1431_v30  ;;  %v171_v51 = vld [vmem:[#allocation2 + $0x1a8] sm:$0xff]  ;;  %v1462_v56 = vcombine.high %v166_v48, %v170_v49  ;;  %v1461_v59 = vcombine.low %v166_v48, %v170_v49  ;;  %v174_v60 = vld [vmem:[#allocation2 + $0x1c0] sm:$0xff]  ;;  %v141_v30 = vld [vmem:[#allocation2 + $0xb8] sm:$0xff]  ;;  %v1425_v31 = vcombine.low %v128_v17, %v132_v19 }
  0x35   :  { %550 = vmatprep.subr.bf16.mxu1 %v1438_v36  ;;  %591 = vmatprep.subr.bf16.mxu0 %v1440_v37  ;;  %v1464_v57 = vcombine.high %v167_v50, %v171_v51  ;;  %v1463_v58 = vcombine.low %v167_v50, %v171_v51  ;;  %v178_v61 = vld [vmem:[#allocation2 + $0x1e0] sm:$0xff]  ;;  %v175_v62 = vld [vmem:[#allocation2 + $0x1c8] sm:$0xff]  ;;  %v1436_v34 = vcombine.high %v137_v29, %v141_v30  ;;  %v144_v35 = vld [vmem:[#allocation2 + $0xd0] sm:$0xff] }
  0x36   :  { %v1470_v63 = vcombine.high %v174_v60, %v178_v61  ;;  %v179_v0 = vld [vmem:[#allocation2 + $0x1e8] sm:$0xff]  ;;  %v1469_v3 = vcombine.low %v174_v60, %v178_v61  ;;  %v148_v36 = vld [vmem:[#allocation2 + $0xf0] sm:$0xff]  ;;  %v145_v37 = vld [vmem:[#allocation2 + $0xd8] sm:$0xff]  ;;  %v1435_v40 = vcombine.low %v137_v29, %v141_v30 }
  0x37   :  { %v1471_v1 = vcombine.low %v175_v62, %v179_v0  ;;  %v1472_v2 = vcombine.high %v175_v62, %v179_v0  ;;  %v1442_v41 = vcombine.high %v144_v35, %v148_v36  ;;  %v152_v43 = vld [vmem:[#allocation2 + $0x110] sm:$0xff]  ;;  %v169_v61 = vld [vmem:[#allocation2 + $0x198] sm:$0xff]  ;;  %v1652_v17 = vld [vmem:[#allocation4 + $0x48] sm:$0xff]  }
  0x38   :  { %551 = vmatpush1.bf16.msra.mxu1 %v1437_v39  ;;  %592 = vmatpush1.bf16.msra.mxu0 %v1439_v38  ;;  %v149_v38 = vld [vmem:[#allocation2 + $0xf8] sm:$0xff]  ;;  %v1433_v39 = vcombine.low %v136_v27, %v140_v28  ;;  %v160_v51 = vld [vmem:[#allocation2 + $0x150] sm:$0xff]  ;;  %v1654_v19 = vld [vmem:[#allocation4 + $0x8] sm:$0xff]  }
  0x39   :  { %552 = vmatprep.subr.bf16.mxu1 %v1446_v44  ;;  %593 = vmatprep.subr.bf16.mxu0 %v1448_v45  ;;  %v1444_v42 = vcombine.high %v145_v37, %v149_v38  ;;  %v156_v44 = vld [vmem:[#allocation2 + $0x130] sm:$0xff]  ;;  %v153_v45 = vld [vmem:[#allocation2 + $0x118] sm:$0xff]  ;;  %v1443_v48 = vcombine.low %v145_v37, %v149_v38  ;;  %v1655_v20 = vld [vmem:[#allocation4 + $0x88] sm:$0xff]  }
  0x3a   :  { %v1450_v49 = vcombine.high %v152_v43, %v156_v44  ;;  %v172_v60 = vld [vmem:[#allocation2 + $0x1b0] sm:$0xff]  ;;  %v173_v62 = vld [vmem:[#allocation2 + $0x1b8] sm:$0xff]  ;;  %v1664_v29 = vld [vmem:[#allocation4 + $0x60] sm:$0xff]  }
  0x3b   :  { %v180_v4 = vld [vmem:[#allocation2 + $0x1f0] sm:$0xff]  ;;  %v177_v5 = vld [vmem:[#allocation2 + $0x1d8] sm:$0xff]  ;;  %v1467_v8 = vcombine.low %v169_v61, %v173_v62  ;;  %v1665_v30 = vld [vmem:[#allocation4 + $0xe0] sm:$0xff]  }
  0x3c   :  { %553 = vmatpush1.bf16.msra.mxu1 %v1445_v47  ;;  %594 = vmatpush1.bf16.msra.mxu0 %v1447_v46  ;;  %v157_v46 = vld [vmem:[#allocation2 + $0x138] sm:$0xff]  ;;  %v1441_v47 = vcombine.low %v144_v35, %v148_v36  ;;  %v1656_v21 = vld [vmem:[#allocation4 + $0x50] sm:$0xff]   ;;  %v1670_v35 = vld [vmem:[#allocation4 + $0x28] sm:$0xff]  }
  0x3d   :  { %554 = vmatprep.subr.bf16.mxu1 %v1454_v52  ;;  %595 = vmatprep.subr.bf16.mxu0 %v1456_v53  ;;  %v1452_v50 = vcombine.high %v153_v45, %v157_v46  ;;  %v164_v52 = vld [vmem:[#allocation2 + $0x170] sm:$0xff]  ;;  %v161_v53 = vld [vmem:[#allocation2 + $0x158] sm:$0xff]  ;;  %v1671_v36 = vld [vmem:[#allocation4 + $0xa8] sm:$0xff]  }
  0x3e   :  { %v181_v6 = vld [vmem:[#allocation2 + $0x1f8] sm:$0xff]  ;;  %v1672_v37 = vld [vmem:[#allocation4 + $0x70] sm:$0xff]  }
  0x3f   :  { %v1661_v27 = vld [vmem:[#allocation4 + $0xd8] sm:$0xff]   ;;  %v1673_v38 = vld [vmem:[#allocation4 + $0xf0] sm:$0xff]  }
  0x40   :  { %555 = vmatpush1.bf16.msra.mxu1 %v1453_v55  ;;  %596 = vmatpush1.bf16.msra.mxu0 %v1455_v54  ;;  %v165_v54 = vld [vmem:[#allocation2 + $0x178] sm:$0xff]  ;;  %v1449_v55 = vcombine.low %v152_v43, %v156_v44 }
  0x41   :  { %556 = vmatprep.subr.bf16.mxu1 %v1462_v56  ;;  %597 = vmatprep.subr.bf16.mxu0 %v1464_v57  ;;  %v1451_v56 = vcombine.low %v153_v45, %v157_v46  ;;  %v1458_v57 = vcombine.high %v160_v51, %v164_v52  ;;  %v1459_v0 = vcombine.low %v161_v53, %v165_v54  ;;  %v1662_v28 = vld [vmem:[#allocation4 + $0x18] sm:$0xff]   ;;  %v1680_v45 = vld [vmem:[#allocation4 + $0x140] sm:$0xff]  }
  0x42   :  { %v1678_v43 = vld [vmem:[#allocation4 + $0x38] sm:$0xff]   ;;  %v1681_v46 = vld [vmem:[#allocation4 + $0x1c0] sm:$0xff]  }
  0x43   :  { %v1679_v44 = vld [vmem:[#allocation4 + $0xb8] sm:$0xff]  }
  0x44   :  { %557 = vmatpush1.bf16.msra.mxu1 %v1461_v59  ;;  %598 = vmatpush1.bf16.msra.mxu0 %v1463_v58  ;;  %v1460_v58 = vcombine.high %v161_v53, %v165_v54  ;;  %v168_v59 = vld [vmem:[#allocation2 + $0x190] sm:$0xff] }
  0x45   :  { %558 = vmatprep.subr.bf16.mxu1 %v1470_v63  ;;  %599 = vmatprep.subr.bf16.mxu0 %v1472_v2  ;;  %v1457_v63 = vcombine.low %v160_v51, %v164_v52  ;;  %v1468_v2 = vcombine.high %v169_v61, %v173_v62  ;;  %v1856_v51 = vld [vmem:[%s1882_s4] sm:$0xff] }
  0x48   :  { %559 = vmatpush1.bf16.msra.mxu1 %v1469_v3  ;;  %600 = vmatpush1.bf16.msra.mxu0 %v1471_v1  ;;  %v1466_v1 = vcombine.high %v168_v59, %v172_v60  ;;  %v176_v3 = vld [vmem:[#allocation2 + $0x1d0] sm:$0xff] }
  0x49   :  { %626 = vmatprep.subr.bf16.mxu1 %v1418_v7  ;;  %667 = vmatprep.subr.bf16.mxu0 %v1420_v11  ;;  %v1465_v7 = vcombine.low %v168_v59, %v172_v60  ;;  %v1473_v11 = vcombine.low %v176_v3, %v180_v4 }
  0xfe   :  { %v110_v14 = vpop.f32.mrb[0].mxu0 }
  0xff   :  { %v111_v15 = vadd.f32 %v1410_v13, %v110_v14  ;;  %v1636_v16 = vpop.f32.mrb[1].mxu0  ;;  %v1648_v13 = vld [vmem:[#allocation4 + $0x40] sm:$0xff]  }
 0x100   :  { %v113_v18 = vpop.f32.mrb[2].mxu0  ;;  %v1649_v14 = vld [vmem:[#allocation4 + $0xc0] sm:$0xff]  }
 0x101   :  { %v116_v22 = vmax.f32 %v111_v15, 0.0  ;;  %v1637_v23 = vpop.f32.mrb[3].mxu0  ;;  %v1650_v15 = vld [vmem:[#allocation4] sm:$0xff]   ;;  %v1653_v18 = vld [vmem:[#allocation4 + $0xc8] sm:$0xff]  }
 0x102   :  { %v1651_v16 = vld [vmem:[#allocation4 + $0x80] sm:$0xff]   ;;  %v1658_v23 = vld [vmem:[#allocation4 + $0x10] sm:$0xff]  }
 0x103   :  { %v1843_v24 = vpack.c.bf16 %v116_v22, %v116_v22  ;;  %v1657_v22 = vld [vmem:[#allocation4 + $0xd0] sm:$0xff]  }
 0x105   :  { %577 = vmatmul.mubr.bf16.vlgmr.msra.gmra.mrb[0].mxu1 %v1843_v24  ;;  %618 = vmatmul.mubr.bf16.vlgmr.msra.gmra.mrb[4].mxu0 %v1843_v24 }
 0x106   :  { %627 = vmatpush1.bf16.msra.mxu1 %v1417_v9  ;;  %668 = vmatpush1.bf16.msra.mxu0 %v1419_v10  ;;  %v1474_v9 = vcombine.high %v176_v3, %v180_v4  ;;  %v1476_v10 = vcombine.high %v177_v5, %v181_v6 }
 0x107   :  { %628 = vmatprep.subr.bf16.mxu1 %v1426_v25  ;;  %669 = vmatprep.subr.bf16.mxu0 %v1428_v26  ;;  %v1659_v25 = vld [vmem:[#allocation4 + $0x90] sm:$0xff]   ;;  %v1660_v26 = vld [vmem:[#allocation4 + $0x58] sm:$0xff]  }
 0x108   :  { %658 = vmatprep.mubr.bf16.mxu1 %v1768_v12  ;;  %699 = vmatprep.mubr.bf16.mxu0 %v1768_v12  ;;  %v1475_v12 = vcombine.low %v177_v5, %v181_v6 }
 0x10a   :  { %629 = vmatpush1.bf16.msra.mxu1 %v1425_v31  ;;  %670 = vmatpush1.bf16.msra.mxu0 %v1427_v32  ;;  %v1666_v31 = vld [vmem:[#allocation4 + $0x20] sm:$0xff]  }
 0x10b   :  { %630 = vmatprep.subr.bf16.mxu1 %v1434_v33  ;;  %671 = vmatprep.subr.bf16.mxu0 %v1436_v34  ;;  %v1667_v32 = vld [vmem:[#allocation4 + $0xa0] sm:$0xff]   ;;  %v1668_v33 = vld [vmem:[#allocation4 + $0x68] sm:$0xff]  }
 0x10c   :  { %v1669_v34 = vld [vmem:[#allocation4 + $0xe8] sm:$0xff]  }
 0x10e   :  { %631 = vmatpush1.bf16.msra.mxu1 %v1433_v39  ;;  %672 = vmatpush1.bf16.msra.mxu0 %v1435_v40  ;;  %v1674_v39 = vld [vmem:[#allocation4 + $0x30] sm:$0xff]  }
 0x10f   :  { %632 = vmatprep.subr.bf16.mxu1 %v1442_v41  ;;  %673 = vmatprep.subr.bf16.mxu0 %v1444_v42  ;;  %v1675_v40 = vld [vmem:[#allocation4 + $0xb0] sm:$0xff]   ;;  %v1676_v41 = vld [vmem:[#allocation4 + $0x78] sm:$0xff]  }
 0x110   :  { %v1677_v42 = vld [vmem:[#allocation4 + $0xf8] sm:$0xff]  }
 0x112   :  { %633 = vmatpush1.bf16.msra.mxu1 %v1441_v47  ;;  %674 = vmatpush1.bf16.msra.mxu0 %v1443_v48  ;;  %v184_v47 = vlaneseq }
 0x113   :  { %634 = vmatprep.subr.bf16.mxu1 %v1450_v49  ;;  %675 = vmatprep.subr.bf16.mxu0 %v1452_v50 }
 0x114   :  { %v1849_v48 = vshrl.u32 %v184_v47, 7  ;;  %v1707_v47 = vld [vmem:[#allocation4 + $0x1b0] sm:$0xff]  }
 0x116   :  { %635 = vmatpush1.bf16.msra.mxu1 %v1449_v55  ;;  %676 = vmatpush1.bf16.msra.mxu0 %v1451_v56  ;;  %v186_v49 = vsub.s32 0, %v1849_v48  ;;  %v194_v50 = vsub.s32 2, %v1849_v48  ;;  %v190_v52 = vsub.s32 1, %v1849_v48  ;;  %v198_v53 = vsub.s32 3, %v1849_v48 }
 0x117   :  { %636 = vmatprep.subr.bf16.mxu1 %v1458_v57  ;;  %677 = vmatprep.subr.bf16.mxu0 %v1460_v58 }
 0x118   :  { %v187_v54 = vrot.slane %v1856_v51, %v186_v49  ;;  %v195_v55 = vrot.slane %v1856_v51, %v194_v50  ;;  %v191_v56 = vrot.slane %v1856_v51, %v190_v52  ;;  %v199_v57 = vrot.slane %v1856_v51, %v198_v53  ;;  %v1708_v49 = vld [vmem:[#allocation4 + $0x178] sm:$0xff]  }
 0x11a   :  { %637 = vmatpush1.bf16.msra.mxu1 %v1457_v63  ;;  %678 = vmatpush1.bf16.msra.mxu0 %v1459_v0 }
 0x11b   :  { %638 = vmatprep.subr.bf16.mxu1 %v1466_v1  ;;  %679 = vmatprep.subr.bf16.mxu0 %v1468_v2 }
 0x11e   :  { %639 = vmatpush1.bf16.msra.mxu1 %v1465_v7  ;;  %680 = vmatpush1.bf16.msra.mxu0 %v1467_v8 }
 0x11f   :  { %640 = vmatprep.subr.bf16.mxu1 %v1474_v9  ;;  %681 = vmatprep.subr.bf16.mxu0 %v1476_v10 }
 0x122   :  { %641 = vmatpush1.bf16.msra.mxu1 %v1473_v11  ;;  %682 = vmatpush1.bf16.msra.mxu0 %v1475_v12  ;;  %v1682_v12 = vld [vmem:[#allocation4 + $0x100] sm:$0xff]  }
 0x123   :  { %1544 = vmatprep.subr.bf16.mxu1 %v1648_v13  ;;  %1566 = vmatprep.subr.bf16.mxu0 %v1649_v14  ;;  %v1683_v13 = vld [vmem:[#allocation4 + $0x180] sm:$0xff]  }
 0x125   :  { %659 = vmatmul.mubr.bf16.vlgmr.msra.gmra.mrb[4].mxu1 %v1843_v24  ;;  %700 = vmatmul.mubr.bf16.vlgmr.msra.gmra.mrb[8].mxu0 %v1843_v24  ;;  %v1663_v24 = vld [vmem:[#allocation4 + $0x98] sm:$0xff]  }
 0x126   :  { %1545 = vmatpush3.bf16.msra.mxu1 %v1650_v15  ;;  %1567 = vmatpush3.bf16.msra.mxu0 %v1651_v16  ;;  %v1684_v16 = vld [vmem:[#allocation4 + $0x148] sm:$0xff]  }
 0x127   :  { %1546 = vmatprep.subr.bf16.mxu1 %v1652_v17  ;;  %1568 = vmatprep.subr.bf16.mxu0 %v1653_v18  ;;  %v1685_v17 = vld [vmem:[#allocation4 + $0x1c8] sm:$0xff]  }
 0x128   :  { %v1686_v18 = vld [vmem:[#allocation4 + $0x108] sm:$0xff]  }
 0x12a   :  { %1547 = vmatpush3.bf16.msra.mxu1 %v1654_v19  ;;  %1569 = vmatpush3.bf16.msra.mxu0 %v1655_v20  ;;  %v1687_v19 = vld [vmem:[#allocation4 + $0x188] sm:$0xff]   ;;  %v1688_v20 = vld [vmem:[#allocation4 + $0x150] sm:$0xff]  }
 0x12b   :  { %1548 = vmatprep.subr.bf16.mxu1 %v1656_v21  ;;  %1570 = vmatprep.subr.bf16.mxu0 %v1657_v22  ;;  %v1689_v21 = vld [vmem:[#allocation4 + $0x1d0] sm:$0xff]  }
 0x12c   :  { %v1690_v22 = vld [vmem:[#allocation4 + $0x110] sm:$0xff]  }
 0x12e   :  { %1549 = vmatpush3.bf16.msra.mxu1 %v1658_v23  ;;  %1571 = vmatpush3.bf16.msra.mxu0 %v1659_v25  ;;  %v1691_v23 = vld [vmem:[#allocation4 + $0x190] sm:$0xff]   ;;  %v1692_v25 = vld [vmem:[#allocation4 + $0x158] sm:$0xff]  }
 0x12f   :  { %1550 = vmatprep.subr.bf16.mxu1 %v1660_v26  ;;  %1572 = vmatprep.subr.bf16.mxu0 %v1661_v27  ;;  %v1693_v26 = vld [vmem:[#allocation4 + $0x1d8] sm:$0xff]  }
 0x130   :  { %v1694_v27 = vld [vmem:[#allocation4 + $0x118] sm:$0xff]  }
 0x132   :  { %1551 = vmatpush3.bf16.msra.mxu1 %v1662_v28  ;;  %1573 = vmatpush3.bf16.msra.mxu0 %v1663_v24  ;;  %v1695_v28 = vld [vmem:[#allocation4 + $0x198] sm:$0xff]   ;;  %v1696_v24 = vld [vmem:[#allocation4 + $0x160] sm:$0xff]  }
 0x133   :  { %1552 = vmatprep.subr.bf16.mxu1 %v1664_v29  ;;  %1574 = vmatprep.subr.bf16.mxu0 %v1665_v30  ;;  %v1697_v29 = vld [vmem:[#allocation4 + $0x1e0] sm:$0xff]  }
 0x134   :  { %v1698_v30 = vld [vmem:[#allocation4 + $0x120] sm:$0xff]  }
 0x136   :  { %1553 = vmatpush3.bf16.msra.mxu1 %v1666_v31  ;;  %1575 = vmatpush3.bf16.msra.mxu0 %v1667_v32  ;;  %v1699_v31 = vld [vmem:[#allocation4 + $0x1a0] sm:$0xff]   ;;  %v1700_v32 = vld [vmem:[#allocation4 + $0x168] sm:$0xff]  }
 0x137   :  { %1554 = vmatprep.subr.bf16.mxu1 %v1668_v33  ;;  %1576 = vmatprep.subr.bf16.mxu0 %v1669_v34  ;;  %v1701_v33 = vld [vmem:[#allocation4 + $0x1e8] sm:$0xff]   ;;  %v202_v34 = vsub.s32 4, %v1849_v48 }
 0x13a   :  { %1555 = vmatpush3.bf16.msra.mxu1 %v1670_v35  ;;  %1577 = vmatpush3.bf16.msra.mxu0 %v1671_v36  ;;  %v210_v35 = vsub.s32 6, %v1849_v48  ;;  %v1702_v36 = vld [vmem:[#allocation4 + $0x128] sm:$0xff]  }
 0x13b   :  { %1556 = vmatprep.subr.bf16.mxu1 %v1672_v37  ;;  %1578 = vmatprep.subr.bf16.mxu0 %v1673_v38  ;;  %v1703_v37 = vld [vmem:[#allocation4 + $0x1a8] sm:$0xff]   ;;  %v206_v38 = vsub.s32 5, %v1849_v48 }
 0x13e   :  { %1557 = vmatpush3.bf16.msra.mxu1 %v1674_v39  ;;  %1579 = vmatpush3.bf16.msra.mxu0 %v1675_v40  ;;  %v214_v39 = vsub.s32 7, %v1849_v48  ;;  %v1704_v40 = vld [vmem:[#allocation4 + $0x170] sm:$0xff]   ;;  %v1709_v48 = vld [vmem:[#allocation4 + $0x1f8] sm:$0xff]  }
 0x13f   :  { %1558 = vmatprep.subr.bf16.mxu1 %v1676_v41  ;;  %1580 = vmatprep.subr.bf16.mxu0 %v1677_v42  ;;  %v1705_v41 = vld [vmem:[#allocation4 + $0x1f0] sm:$0xff]   ;;  %v203_v42 = vrot.slane %v1856_v51, %v202_v34 }
 0x142   :  { %1559 = vmatpush3.bf16.msra.mxu1 %v1678_v43  ;;  %1581 = vmatpush3.bf16.msra.mxu0 %v1679_v44  ;;  %v211_v43 = vrot.slane %v1856_v51, %v210_v35  ;;  %v207_v44 = vrot.slane %v1856_v51, %v206_v38 }
 0x143   :  { %1588 = vmatprep.subr.bf16.mxu1 %v1680_v45  ;;  %1610 = vmatprep.subr.bf16.mxu0 %v1681_v46  ;;  %v215_v45 = vrot.slane %v1856_v51, %v214_v39  ;;  %v1706_v46 = vld [vmem:[#allocation4 + $0x130] sm:$0xff]   ;;  %v1711_v51 = vld [vmem:[#allocation4 + $0x1b8] sm:$0xff]  }
 0x1d8   :  { %v578_v58 = vpop.f32.mrb[0].mxu1  ;;  %v619_v59 = vpop.f32.mrb[4].mxu0 }
 0x1d9   :  { %v579_v60 = vadd.f32 %v578_v58, %v187_v54  ;;  %v620_v61 = vadd.f32 %v619_v59, %v195_v55  ;;  %v580_v62 = vpop.f32.mrb[1].mxu1  ;;  %v621_v63 = vpop.f32.mrb[5].mxu0 }
 0x1da   :  { %v581_v0 = vadd.f32 %v580_v62, %v191_v56  ;;  %v622_v1 = vadd.f32 %v621_v63, %v199_v57  ;;  %v582_v2 = vpop.f32.mrb[2].mxu1  ;;  %v623_v3 = vpop.f32.mrb[6].mxu0 }
 0x1db   :  { %v708_v4 = vmax.f32 %v579_v60, 0.0  ;;  %v710_v5 = vmax.f32 %v620_v61, 0.0  ;;  %v583_v6 = vpop.f32.mrb[3].mxu1  ;;  %v624_v7 = vpop.f32.mrb[7].mxu0  ;;  %v1710_v61 = vld [vmem:[#allocation4 + $0x138] sm:$0xff]  }
 0x1dc   :  { %v709_v8 = vmax.f32 %v581_v0, 0.0  ;;  %v711_v9 = vmax.f32 %v622_v1, 0.0 }
 0x1dd   :  { %v716_v14 = vpack.c.bf16 %v708_v4, %v708_v4  ;;  %v718_v15 = vpack.c.bf16 %v710_v5, %v710_v5 }
 0x1de   :  { %v717_v10 = vpack.c.bf16 %v709_v8, %v709_v8  ;;  %v719_v11 = vpack.c.bf16 %v711_v9, %v711_v9 }
 0x1e0   :  { %1275 = vmatprep.mubr.bf16.mxu1 %v717_v10  ;;  %1315 = vmatprep.mubr.bf16.mxu0 %v719_v11  ;;  %v1477_v10 = vld [vmem:[%s1884_s6] ss:$0 sm:$0xff] }
 0x1e1   :  { %1276 = vmatmul.mubr.bf16.vlgmr.msra.gmra.mrb[8].mxu1 %v716_v14  ;;  %1316 = vmatmul.mubr.bf16.vlgmr.msra.gmra.mrb[12].mxu0 %v718_v15 }
 0x1e2   :  { %1589 = vmatpush3.bf16.msra.mxu1 %v1682_v12  ;;  %1611 = vmatpush3.bf16.msra.mxu0 %v1683_v13 }
 0x1e3   :  { %1590 = vmatprep.subr.bf16.mxu1 %v1684_v16  ;;  %1612 = vmatprep.subr.bf16.mxu0 %v1685_v17 }
 0x1e6   :  { %1591 = vmatpush3.bf16.msra.mxu1 %v1686_v18  ;;  %1613 = vmatpush3.bf16.msra.mxu0 %v1687_v19 }
 0x1e7   :  { %1592 = vmatprep.subr.bf16.mxu1 %v1688_v20  ;;  %1614 = vmatprep.subr.bf16.mxu0 %v1689_v21 }
 0x1ea   :  { %1593 = vmatpush3.bf16.msra.mxu1 %v1690_v22  ;;  %1615 = vmatpush3.bf16.msra.mxu0 %v1691_v23 }
 0x1eb   :  { %1594 = vmatprep.subr.bf16.mxu1 %v1692_v25  ;;  %1616 = vmatprep.subr.bf16.mxu0 %v1693_v26 }
 0x1ee   :  { %1595 = vmatpush3.bf16.msra.mxu1 %v1694_v27  ;;  %1617 = vmatpush3.bf16.msra.mxu0 %v1695_v28 }
 0x1ef   :  { %1596 = vmatprep.subr.bf16.mxu1 %v1696_v24  ;;  %1618 = vmatprep.subr.bf16.mxu0 %v1697_v29 }
 0x1f2   :  { %1597 = vmatpush3.bf16.msra.mxu1 %v1698_v30  ;;  %1619 = vmatpush3.bf16.msra.mxu0 %v1699_v31 }
 0x1f3   :  { %1598 = vmatprep.subr.bf16.mxu1 %v1700_v32  ;;  %1620 = vmatprep.subr.bf16.mxu0 %v1701_v33 }
 0x1f6   :  { %1599 = vmatpush3.bf16.msra.mxu1 %v1702_v36  ;;  %1621 = vmatpush3.bf16.msra.mxu0 %v1703_v37 }
 0x1f7   :  { %1600 = vmatprep.subr.bf16.mxu1 %v1704_v40  ;;  %1622 = vmatprep.subr.bf16.mxu0 %v1705_v41 }
 0x1f8   :  { %v660_v50 = vpop.f32.mrb[4].mxu1  ;;  %v701_v52 = vpop.f32.mrb[8].mxu0 }
 0x1f9   :  { %v661_v53 = vadd.f32 %v660_v50, %v203_v42  ;;  %v702_v54 = vadd.f32 %v701_v52, %v211_v43  ;;  %v662_v55 = vpop.f32.mrb[5].mxu1  ;;  %v703_v56 = vpop.f32.mrb[9].mxu0 }
 0x1fa   :  { %v663_v57 = vadd.f32 %v662_v55, %v207_v44  ;;  %v704_v58 = vadd.f32 %v703_v56, %v215_v45  ;;  %v664_v59 = vpop.f32.mrb[6].mxu1  ;;  %v705_v60 = vpop.f32.mrb[10].mxu0  ;;  %1601 = vmatpush3.bf16.msra.mxu1 %v1706_v46  ;;  %1623 = vmatpush3.bf16.msra.mxu0 %v1707_v47 }
 0x1fb   :  { %v712_v62 = vmax.f32 %v661_v53, 0.0  ;;  %v714_v63 = vmax.f32 %v702_v54, 0.0  ;;  %v665_v0 = vpop.f32.mrb[7].mxu1  ;;  %v706_v1 = vpop.f32.mrb[11].mxu0  ;;  %1602 = vmatprep.subr.bf16.mxu1 %v1708_v49  ;;  %1624 = vmatprep.subr.bf16.mxu0 %v1709_v48 }
 0x1fc   :  { %v713_v2 = vmax.f32 %v663_v57, 0.0  ;;  %v715_v3 = vmax.f32 %v704_v58, 0.0 }
 0x1fd   :  { %v720_v6 = vpack.c.bf16 %v712_v62, %v712_v62  ;;  %v722_v7 = vpack.c.bf16 %v714_v63, %v714_v63 }
 0x1fe   :  { %v721_v4 = vpack.c.bf16 %v713_v2, %v713_v2  ;;  %v723_v5 = vpack.c.bf16 %v715_v3, %v715_v3  ;;  %1603 = vmatpush3.bf16.msra.mxu1 %v1710_v61  ;;  %1625 = vmatpush3.bf16.msra.mxu0 %v1711_v51 }
 0x200   :  { %1355 = vmatprep.mubr.bf16.mxu1 %v721_v4  ;;  %1395 = vmatprep.mubr.bf16.mxu0 %v723_v5 }
 0x201   :  { %1356 = vmatmul.mubr.bf16.vlgmr.msra.gmra.mrb[12].mxu1 %v720_v6  ;;  %1396 = vmatmul.mubr.bf16.vlgmr.msra.gmra.mrb[16].mxu0 %v722_v7 }
 0x2b4   :  { %v1560_v8 = vpop.f32.mrb[8].mxu1  ;;  %v1582_v9 = vpop.f32.mrb[12].mxu0 }
 0x2b5   :  { %v1561_v11 = vpop.f32.mrb[9].mxu1  ;;  %v1583_v12 = vpop.f32.mrb[13].mxu0 }
 0x2b6   :  { %v1562_v13 = vadd.f32 %v1561_v11, %v1560_v8  ;;  %v1584_v14 = vadd.f32 %v1583_v12, %v1582_v9  ;;  %v1563_v15 = vpop.f32.mrb[10].mxu1  ;;  %v1585_v16 = vpop.f32.mrb[14].mxu0 }
 0x2b7   :  { %v1564_v17 = vpop.f32.mrb[11].mxu1  ;;  %v1586_v18 = vpop.f32.mrb[15].mxu0 }
 0x2b8   :  { %v1278_v19 = vadd.f32 %v1562_v13, %v1477_v10 }
 0x2ba   :  { %v1318_v20 = vadd.f32 %v1584_v14, %v1278_v19 }
 0x2d4   :  { %v1604_v21 = vpop.f32.mrb[12].mxu1  ;;  %v1626_v22 = vpop.f32.mrb[16].mxu0 }
 0x2d5   :  { %v1605_v23 = vpop.f32.mrb[13].mxu1  ;;  %v1627_v25 = vpop.f32.mrb[17].mxu0 }
 0x2d6   :  { %v1606_v26 = vadd.f32 %v1605_v23, %v1604_v21  ;;  %v1628_v27 = vadd.f32 %v1627_v25, %v1626_v22  ;;  %v1607_v28 = vpop.f32.mrb[14].mxu1  ;;  %v1629_v24 = vpop.f32.mrb[18].mxu0 }
 0x2d7   :  { %v1608_v29 = vpop.f32.mrb[15].mxu1  ;;  %v1630_v30 = vpop.f32.mrb[19].mxu0 }
 0x2d8   :  { %v1358_v31 = vadd.f32 %v1606_v26, %v1318_v20 }
 0x2da   :  { %v1398_v32 = vadd.f32 %v1628_v27, %v1358_v31 }
 0x2dc   :  { %1403 = vst [vmem:[%s1885_s7] sm:$0xff] %v1398_v32 }
 0x2dd   :  { %1408 = vsyncpa [#allocation3], 1 }
 0x2de   :  { %1409 = vsyncpa [#allocation5], 1 }

</bundles_post_ra>
